<compile_context>
chip_gen: v6e
topology: v6e:2x2x1
jax: 0.10.0
libtpu: 0.0.40
codegen_flags: <defaults>
</compile_context>

<pallas_src>
import jax
import jax.numpy as jnp
from jax.experimental import pallas as pl
from jax.experimental.pallas import tpu as pltpu

MAX_TILE_PIX = 4096  # pixels per tile upper bound (working set stays << VMEM)


def _pick_tile(hw, max_tile=MAX_TILE_PIX):
    """Largest multiple of 128 that divides hw, capped at max_tile."""
    assert hw % 128 == 0
    best, t = 128, 256
    while t <= min(hw, max_tile):
        if hw % t == 0:
            best = t
        t += 128
    return best


# ----------------------------- Pallas kernel -------------------------------

def mlp_kernel(coords_ref, w0_ref, b0_ref, *refs):
    """One (batch, pixel-tile) grid cell in (feature, pixel) lane-dense layout.

    coords_ref : (2, TILE)   transposed pixel coordinates
    w0_ref     : (D, 2)      affine-folded random_linear weight (transposed)
    b0_ref     : (D, 1)      affine-folded random_linear bias   (transposed)
    refs[:-3]  : hidden (w^T, b^T) pairs, shapes (out, in) / (out, 1)
    refs[-3]   : (3, C)      color-folded final weight (transposed)
    refs[-2]   : (3, 1)      color-folded final bias   (transposed)
    refs[-1]   : out_ref (3, TILE)
    """
    out_ref = refs[-1]
    wL_ref, bL_ref = refs[-3], refs[-2]
    hidden = refs[:-3]

    c = coords_ref[...]                                          # (2, TILE)

    # folded affine transform + random_linear, then sigmoid (no_grad branch)
    h = jax.nn.sigmoid(
        jnp.dot(w0_ref[...], c, preferred_element_type=jnp.float32)
        + b0_ref[...])                                           # (D, TILE)

    # hidden layers: linear + relu
    n_hidden = len(hidden) // 2
    for li in range(n_hidden):
        w = hidden[2 * li][...]
        b = hidden[2 * li + 1][...]
        h = jnp.maximum(
            jnp.dot(w, h, preferred_element_type=jnp.float32) + b, 0.0)

    # folded final linear + per-sample color transform, lane-dense store
    out_ref[...] = (
        jnp.dot(wL_ref[...], h, preferred_element_type=jnp.float32)
        + bL_ref[...])                                           # (3, TILE)


# ------------------------------ glue helpers -------------------------------

def _prepare(x, sample_idx, params):
    """Gather per-sample params, build affine (A, t) and effective color terms."""
    B, H, W, C = x.shape
    HW = H * W
    coords_t = jnp.transpose(x.reshape(B, HW, 2), (0, 2, 1))     # (B, 2, HW)

    tv = params["transform_vectors"][sample_idx]                 # (B, 2)
    ang = params["transform_angles"][sample_idx][:, 0]           # (B,)  zeros: rotation=False
    dx, dy = tv[:, 0], tv[:, 1]
    cs_, sn_ = jnp.cos(ang), jnp.sin(ang)
    # theta = [[cos, -sin, dx], [sin, cos, dy]];  [x,y,1] @ theta.T == coords @ A + t
    A = jnp.stack([jnp.stack([cs_, sn_], -1),
                   jnp.stack([-sn_, cs_], -1)], axis=1)          # (B, 2, 2)
    t = jnp.stack([dx, dy], -1)[:, None, :]                      # (B, 1, 2)

    nz = (sample_idx != 0).astype(jnp.float32)[:, None]          # (B, 1)
    eff_scale = nz * params["color_scales"][sample_idx] + (1.0 - nz)   # (B, 3)
    eff_shift = nz * params["color_shifts"][sample_idx]                # (B, 3)

    return coords_t, A, t, eff_scale, eff_shift, dx, dy


def _fold_params(A, t, eff_scale, eff_shift, layers):
    """Fold affine into layer 0 and color transform into the last layer, transpose all."""
    w0, b0 = layers[0]                                           # (2, D), (1, D)
    w0_fold = jnp.einsum("bij,jk->bik", A, w0)                   # (B, 2, D)
    b0_fold = jnp.einsum("bij,jk->bik", t, w0) + b0              # (B, 1, D)
    w0t = jnp.transpose(w0_fold, (0, 2, 1))                      # (B, D, 2)
    b0t = jnp.transpose(b0_fold, (0, 2, 1))                      # (B, D, 1)

    hidden_flat = []
    for w, b in layers[1:-1]:
        hidden_flat.append(jnp.transpose(w))                     # (out, in)
        hidden_flat.append(jnp.transpose(b))                     # (out, 1)

    wL, bL = layers[-1]                                          # (C, 3), (1, 3)
    wL_fold = wL[None] * eff_scale[:, None, :]                   # (B, C, 3)
    bL_fold = bL[None] * eff_scale[:, None, :] + eff_shift[:, None, :]   # (B, 1, 3)
    wLt = jnp.transpose(wL_fold, (0, 2, 1))                      # (B, 3, C)
    bLt = jnp.transpose(bL_fold, (0, 2, 1))                      # (B, 3, 1)

    return w0t, b0t, hidden_flat, wLt, bLt


def fourier_network_forward(x, sample_idx, params):
    B, H, W, C = x.shape
    assert C == 2
    HW = H * W

    coords_t, A, t, eff_scale, eff_shift, dx, dy = _prepare(x, sample_idx, params)
    w0t, b0t, hidden_flat, wLt, bLt = _fold_params(
        A, t, eff_scale, eff_shift, params["layers"])

    # pad pixel axis up to a multiple of 128 so the lane-dense tiling is legal
    hw_pad = ((HW + 127) // 128) * 128
    if hw_pad != HW:
        coords_t = jnp.pad(coords_t, ((0, 0), (0, 0), (0, hw_pad - HW)))
    tile = _pick_tile(hw_pad)

    input_dim = w0t.shape[1]
    num_channels = wLt.shape[2]

    in_specs = [
        # coords: pixel axis (lanes) tiled, batch squeezed
        pl.BlockSpec((pl.Squeezed(), 2, tile), lambda b_, p_: (b_, 0, p_)),
        # folded per-sample first layer
        pl.BlockSpec((pl.Squeezed(), input_dim, 2), lambda b_, p_: (b_, 0, 0)),
        pl.BlockSpec((pl.Squeezed(), input_dim, 1), lambda b_, p_: (b_, 0, 0)),
    ]
    # shared hidden weights/biases stay resident (constant index map)
    for arr in hidden_flat:
        in_specs.append(pl.BlockSpec(arr.shape, lambda b_, p_: (0, 0)))
    in_specs += [
        # folded per-sample final layer (color transform included)
        pl.BlockSpec((pl.Squeezed(), 3, num_channels), lambda b_, p_: (b_, 0, 0)),
        pl.BlockSpec((pl.Squeezed(), 3, 1), lambda b_, p_: (b_, 0, 0)),
    ]
    out_specs = pl.BlockSpec((pl.Squeezed(), 3, tile), lambda b_, p_: (b_, 0, p_))

    grid = (B, hw_pad // tile)
    out_t = pl.pallas_call(
        mlp_kernel,
        out_shape=jax.ShapeDtypeStruct((B, 3, hw_pad), jnp.float32),
        grid_spec=pltpu.PrefetchScalarGridSpec(
            num_scalar_prefetch=0,
            grid=grid,
            in_specs=in_specs,
            out_specs=out_specs,
        ),
        compiler_params=pltpu.CompilerParams(
            dimension_semantics=("parallel", "parallel")),
    )(coords_t, w0t, b0t, *hidden_flat, wLt, bLt)

    out = jnp.transpose(out_t[:, :, :HW], (0, 2, 1)).reshape(B, H, W, 3)

    # variance = exp(log_variance[sample_idx]) — plain XLA elementwise
    variance = jnp.exp(params["log_variance"][sample_idx])

    transforms = [dx, dy]
    return out, transforms, variance


# ------------------------------ pure-JAX ref --------------------------------

def reference_forward(x, sample_idx, params):
    B, H, W, _ = x.shape
    coords = x.reshape(B, H * W, 2)
    _, A, t, eff_scale, eff_shift, dx, dy = _prepare(x, sample_idx, params)
    xt = jnp.einsum("bnk,bkj->bnj", coords, A) + t
    wb = params["layers"]
    h = jax.nn.sigmoid(xt @ wb[0][0] + wb[0][1])
    for li, (w, b) in enumerate(wb[1:]):
        h = h @ w + b
        if li < len(wb) - 2:
            h = jnp.maximum(h, 0.0)
    out = (h * eff_scale[:, None, :] + eff_shift[:, None, :]).reshape(B, H, W, 3)
    variance = jnp.exp(params["log_variance"][sample_idx])
    return out, [dx, dy], variance


# ------------------------------- init params -------------------------------

def init_params(key, input_dim, num_layers, num_channels, num_samples):
    ks = jax.random.split(key, 8 + num_layers)

    def lin(k, fan_in, fan_out):
        k1, k2 = jax.random.split(k)
        w = jax.random.normal(k1, (fan_in, fan_out), jnp.float32) / jnp.sqrt(fan_in)
        b = 0.01 * jax.random.normal(k2, (1, fan_out), jnp.float32)
        return (w, b)

    layers = [lin(ks[0], 2, input_dim)]                  # random_linear (2 -> input_dim)
    dims = [input_dim] + [num_channels] * (num_layers - 1) + [3]
    for i in range(num_layers):
        layers.append(lin(ks[1 + i], dims[i], dims[i + 1]))

    params = {
        "layers": layers,
        "transform_vectors": 0.1 * jax.random.normal(ks[-5], (num_samples, 2), jnp.float32),
        "transform_angles": jnp.zeros((num_samples, 1), jnp.float32),  # rotation=False
        "log_variance": 0.1 * jax.random.normal(ks[-4], (num_samples, 48, 48, 3), jnp.float32),
        "color_scales": 1.0 + 0.1 * jax.random.normal(ks[-3], (num_samples, 3), jnp.float32),
        "color_shifts": 0.1 * jax.random.normal(ks[-2], (num_samples, 3), jnp.float32),
    }
    # TODO(synk): FourierFeatures buffer B and frame_codes (code_dim=0) are unused in forward().
    return params


# ---------------------------------- main ------------------------------------

if __name__ == "__main__":
    B, H, W = 2, 16, 16
    input_dim, num_layers, num_channels, num_samples = 32, 4, 32, 2

    key = jax.random.PRNGKey(0)
    k_params, k_x = jax.random.split(key)
    params = init_params(k_params, input_dim, num_layers, num_channels, num_samples)

    x = jax.random.uniform(k_x, (B, H, W, 2), jnp.float32)   # coordinate grid in [0, 1)
    sample_idx = jnp.array([1, 0], dtype=jnp.int32)

    out, transforms, variance = jax.block_until_ready(
        fourier_network_forward(x, sample_idx, params))

    ref_out, ref_transforms, ref_var = reference_forward(x, sample_idx, params)

    assert out.shape == (B, H, W, 3)
    assert variance.shape == (B, 48, 48, 3)
    assert len(transforms) == 2 and transforms[0].shape == (B,)
    assert jnp.allclose(out, ref_out, atol=1e-2, rtol=1e-2)
    assert jnp.allclose(variance, ref_var, atol=1e-4, rtol=1e-4)

    print("KERNEL_OK")
</pallas_src>

<mosaic_0001>
module attributes {stable_mosaic.version = 11 : i64} {
  func.func @mlp_kernel(%arg0: i32, %arg1: i32, %arg2: memref<1x2x256xf32, #tpu.memory_space<vmem>>, %arg3: memref<1x32x2xf32, #tpu.memory_space<vmem>>, %arg4: memref<1x32x1xf32, #tpu.memory_space<vmem>>, %arg5: memref<32x32xf32, #tpu.memory_space<vmem>>, %arg6: memref<32x1xf32, #tpu.memory_space<vmem>>, %arg7: memref<32x32xf32, #tpu.memory_space<vmem>>, %arg8: memref<32x1xf32, #tpu.memory_space<vmem>>, %arg9: memref<32x32xf32, #tpu.memory_space<vmem>>, %arg10: memref<32x1xf32, #tpu.memory_space<vmem>>, %arg11: memref<1x3x32xf32, #tpu.memory_space<vmem>>, %arg12: memref<1x3x1xf32, #tpu.memory_space<vmem>>, %arg13: memref<1x3x256xf32, #tpu.memory_space<vmem>>) attributes {dimension_semantics = [#tpu.dimension_semantics<parallel>, #tpu.dimension_semantics<parallel>], iteration_bounds = array<i64: 2, 1>, scalar_prefetch = 0 : i64, scratch_operands = 0 : i64, tpu.core_type = #tpu.core_type<tc>, window_params = [{transform_indices = @transform_0, window_bounds = array<i64: 1, 2, 256>}, {transform_indices = @transform_1, window_bounds = array<i64: 1, 32, 2>}, {transform_indices = @transform_2, window_bounds = array<i64: 1, 32, 1>}, {pipeline_mode = #tpu.pipeline_mode<synchronous>, transform_indices = @transform_3, window_bounds = array<i64: 32, 32>}, {pipeline_mode = #tpu.pipeline_mode<synchronous>, transform_indices = @transform_4, window_bounds = array<i64: 32, 1>}, {pipeline_mode = #tpu.pipeline_mode<synchronous>, transform_indices = @transform_5, window_bounds = array<i64: 32, 32>}, {pipeline_mode = #tpu.pipeline_mode<synchronous>, transform_indices = @transform_6, window_bounds = array<i64: 32, 1>}, {pipeline_mode = #tpu.pipeline_mode<synchronous>, transform_indices = @transform_7, window_bounds = array<i64: 32, 32>}, {pipeline_mode = #tpu.pipeline_mode<synchronous>, transform_indices = @transform_8, window_bounds = array<i64: 32, 1>}, {transform_indices = @transform_9, window_bounds = array<i64: 1, 3, 32>}, {transform_indices = @transform_10, window_bounds = array<i64: 1, 3, 1>}, {transform_indices = @transform_11, window_bounds = array<i64: 1, 3, 256>}]} {
    %c0 = arith.constant 0 : index
    %c0_0 = arith.constant 0 : index
    %c0_1 = arith.constant 0 : index
    %0 = vector.load %arg2[%c0, %c0_0, %c0_1] : memref<1x2x256xf32, #tpu.memory_space<vmem>>, vector<1x2x256xf32>
    %1 = vector.shape_cast %0 : vector<1x2x256xf32> to vector<2x256xf32>
    %c0_2 = arith.constant 0 : index
    %c0_3 = arith.constant 0 : index
    %c0_4 = arith.constant 0 : index
    %2 = vector.load %arg3[%c0_2, %c0_3, %c0_4] : memref<1x32x2xf32, #tpu.memory_space<vmem>>, vector<1x32x2xf32>
    %3 = vector.shape_cast %2 : vector<1x32x2xf32> to vector<32x2xf32>
    %cst = arith.constant dense<0.000000e+00> : vector<32x256xf32>
    %4 = tpu.matmul %3, %1, %cst {dimension_numbers = #tpu.dot_dimension_numbers<[1], [0], [0], [1], [0, 0, 1, 1], [], []>} : vector<32x2xf32>, vector<2x256xf32>, vector<32x256xf32> -> vector<32x256xf32>
    %c0_5 = arith.constant 0 : index
    %c0_6 = arith.constant 0 : index
    %c0_7 = arith.constant 0 : index
    %5 = vector.load %arg4[%c0_5, %c0_6, %c0_7] : memref<1x32x1xf32, #tpu.memory_space<vmem>>, vector<1x32x1xf32>
    %6 = vector.shape_cast %5 : vector<1x32x1xf32> to vector<32x1xf32>
    %7 = vector.broadcast %6 : vector<32x1xf32> to vector<32x256xf32>
    %8 = arith.addf %4, %7 : vector<32x256xf32>
    %9 = arith.negf %8 : vector<32x256xf32>
    %10 = math.exp %9 : vector<32x256xf32>
    %cst_8 = arith.constant 1.000000e+00 : f32
    %11 = vector.broadcast %cst_8 : f32 to vector<32x256xf32>
    %12 = arith.addf %11, %10 : vector<32x256xf32>
    %13 = arith.divf %11, %12 : vector<32x256xf32>
    %c0_9 = arith.constant 0 : index
    %c0_10 = arith.constant 0 : index
    %14 = vector.load %arg5[%c0_9, %c0_10] : memref<32x32xf32, #tpu.memory_space<vmem>>, vector<32x32xf32>
    %c0_11 = arith.constant 0 : index
    %c0_12 = arith.constant 0 : index
    %15 = vector.load %arg6[%c0_11, %c0_12] : memref<32x1xf32, #tpu.memory_space<vmem>>, vector<32x1xf32>
    %cst_13 = arith.constant dense<0.000000e+00> : vector<32x256xf32>
    %16 = tpu.matmul %14, %13, %cst_13 {dimension_numbers = #tpu.dot_dimension_numbers<[1], [0], [0], [1], [0, 0, 1, 1], [], []>} : vector<32x32xf32>, vector<32x256xf32>, vector<32x256xf32> -> vector<32x256xf32>
    %17 = vector.broadcast %15 : vector<32x1xf32> to vector<32x256xf32>
    %18 = arith.addf %16, %17 : vector<32x256xf32>
    %cst_14 = arith.constant 0.000000e+00 : f32
    %19 = vector.broadcast %cst_14 : f32 to vector<32x256xf32>
    %20 = arith.maximumf %18, %19 : vector<32x256xf32>
    %c0_15 = arith.constant 0 : index
    %c0_16 = arith.constant 0 : index
    %21 = vector.load %arg7[%c0_15, %c0_16] : memref<32x32xf32, #tpu.memory_space<vmem>>, vector<32x32xf32>
    %c0_17 = arith.constant 0 : index
    %c0_18 = arith.constant 0 : index
    %22 = vector.load %arg8[%c0_17, %c0_18] : memref<32x1xf32, #tpu.memory_space<vmem>>, vector<32x1xf32>
    %cst_19 = arith.constant dense<0.000000e+00> : vector<32x256xf32>
    %23 = tpu.matmul %21, %20, %cst_19 {dimension_numbers = #tpu.dot_dimension_numbers<[1], [0], [0], [1], [0, 0, 1, 1], [], []>} : vector<32x32xf32>, vector<32x256xf32>, vector<32x256xf32> -> vector<32x256xf32>
    %24 = vector.broadcast %22 : vector<32x1xf32> to vector<32x256xf32>
    %25 = arith.addf %23, %24 : vector<32x256xf32>
    %cst_20 = arith.constant 0.000000e+00 : f32
    %26 = vector.broadcast %cst_20 : f32 to vector<32x256xf32>
    %27 = arith.maximumf %25, %26 : vector<32x256xf32>
    %c0_21 = arith.constant 0 : index
    %c0_22 = arith.constant 0 : index
    %28 = vector.load %arg9[%c0_21, %c0_22] : memref<32x32xf32, #tpu.memory_space<vmem>>, vector<32x32xf32>
    %c0_23 = arith.constant 0 : index
    %c0_24 = arith.constant 0 : index
    %29 = vector.load %arg10[%c0_23, %c0_24] : memref<32x1xf32, #tpu.memory_space<vmem>>, vector<32x1xf32>
    %cst_25 = arith.constant dense<0.000000e+00> : vector<32x256xf32>
    %30 = tpu.matmul %28, %27, %cst_25 {dimension_numbers = #tpu.dot_dimension_numbers<[1], [0], [0], [1], [0, 0, 1, 1], [], []>} : vector<32x32xf32>, vector<32x256xf32>, vector<32x256xf32> -> vector<32x256xf32>
    %31 = vector.broadcast %29 : vector<32x1xf32> to vector<32x256xf32>
    %32 = arith.addf %30, %31 : vector<32x256xf32>
    %cst_26 = arith.constant 0.000000e+00 : f32
    %33 = vector.broadcast %cst_26 : f32 to vector<32x256xf32>
    %34 = arith.maximumf %32, %33 : vector<32x256xf32>
    %c0_27 = arith.constant 0 : index
    %c0_28 = arith.constant 0 : index
    %c0_29 = arith.constant 0 : index
    %35 = vector.load %arg11[%c0_27, %c0_28, %c0_29] : memref<1x3x32xf32, #tpu.memory_space<vmem>>, vector<1x3x32xf32>
    %36 = vector.shape_cast %35 : vector<1x3x32xf32> to vector<3x32xf32>
    %cst_30 = arith.constant dense<0.000000e+00> : vector<3x256xf32>
    %37 = tpu.matmul %36, %34, %cst_30 {dimension_numbers = #tpu.dot_dimension_numbers<[1], [0], [0], [1], [0, 0, 1, 1], [], []>} : vector<3x32xf32>, vector<32x256xf32>, vector<3x256xf32> -> vector<3x256xf32>
    %c0_31 = arith.constant 0 : index
    %c0_32 = arith.constant 0 : index
    %c0_33 = arith.constant 0 : index
    %38 = vector.load %arg12[%c0_31, %c0_32, %c0_33] : memref<1x3x1xf32, #tpu.memory_space<vmem>>, vector<1x3x1xf32>
    %39 = vector.shape_cast %38 : vector<1x3x1xf32> to vector<3x1xf32>
    %40 = vector.broadcast %39 : vector<3x1xf32> to vector<3x256xf32>
    %41 = arith.addf %37, %40 : vector<3x256xf32>
    %c0_34 = arith.constant 0 : index
    %c0_35 = arith.constant 0 : index
    %c0_36 = arith.constant 0 : index
    %42 = vector.load %arg13[%c0_34, %c0_35, %c0_36] : memref<1x3x256xf32, #tpu.memory_space<vmem>>, vector<1x3x256xf32>
    %43 = vector.shape_cast %42 : vector<1x3x256xf32> to vector<3x256xf32>
    %44 = vector.shape_cast %41 : vector<3x256xf32> to vector<1x3x256xf32>
    tpu.vector_store %arg13[%c0_34, %c0_35, %c0_36], %44 {strides = array<i32>} : memref<1x3x256xf32, #tpu.memory_space<vmem>>, vector<1x3x256xf32>,
    return
  }
  func.func @transform_0(%arg0: i32, %arg1: i32) -> (i32, i32, i32) {
    %c0_i32 = arith.constant 0 : i32
    %c0_i32_0 = arith.constant 0 : i32
    return %arg0, %c0_i32, %arg1 : i32, i32, i32
  }
  func.func @transform_1(%arg0: i32, %arg1: i32) -> (i32, i32, i32) {
    %c0_i32 = arith.constant 0 : i32
    %c0_i32_0 = arith.constant 0 : i32
    %c0_i32_1 = arith.constant 0 : i32
    return %arg0, %c0_i32, %c0_i32_0 : i32, i32, i32
  }
  func.func @transform_2(%arg0: i32, %arg1: i32) -> (i32, i32, i32) {
    %c0_i32 = arith.constant 0 : i32
    %c0_i32_0 = arith.constant 0 : i32
    %c0_i32_1 = arith.constant 0 : i32
    return %arg0, %c0_i32, %c0_i32_0 : i32, i32, i32
  }
  func.func @transform_3(%arg0: i32, %arg1: i32) -> (i32, i32) {
    %c0_i32 = arith.constant 0 : i32
    %c0_i32_0 = arith.constant 0 : i32
    %c0_i32_1 = arith.constant 0 : i32
    return %c0_i32, %c0_i32_0 : i32, i32
  }
  func.func @transform_4(%arg0: i32, %arg1: i32) -> (i32, i32) {
    %c0_i32 = arith.constant 0 : i32
    %c0_i32_0 = arith.constant 0 : i32
    %c0_i32_1 = arith.constant 0 : i32
    return %c0_i32, %c0_i32_0 : i32, i32
  }
  func.func @transform_5(%arg0: i32, %arg1: i32) -> (i32, i32) {
    %c0_i32 = arith.constant 0 : i32
    %c0_i32_0 = arith.constant 0 : i32
    %c0_i32_1 = arith.constant 0 : i32
    return %c0_i32, %c0_i32_0 : i32, i32
  }
  func.func @transform_6(%arg0: i32, %arg1: i32) -> (i32, i32) {
    %c0_i32 = arith.constant 0 : i32
    %c0_i32_0 = arith.constant 0 : i32
    %c0_i32_1 = arith.constant 0 : i32
    return %c0_i32, %c0_i32_0 : i32, i32
  }
  func.func @transform_7(%arg0: i32, %arg1: i32) -> (i32, i32) {
    %c0_i32 = arith.constant 0 : i32
    %c0_i32_0 = arith.constant 0 : i32
    %c0_i32_1 = arith.constant 0 : i32
    return %c0_i32, %c0_i32_0 : i32, i32
  }
  func.func @transform_8(%arg0: i32, %arg1: i32) -> (i32, i32) {
    %c0_i32 = arith.constant 0 : i32
    %c0_i32_0 = arith.constant 0 : i32
    %c0_i32_1 = arith.constant 0 : i32
    return %c0_i32, %c0_i32_0 : i32, i32
  }
  func.func @transform_9(%arg0: i32, %arg1: i32) -> (i32, i32, i32) {
    %c0_i32 = arith.constant 0 : i32
    %c0_i32_0 = arith.constant 0 : i32
    %c0_i32_1 = arith.constant 0 : i32
    return %arg0, %c0_i32, %c0_i32_0 : i32, i32, i32
  }
  func.func @transform_10(%arg0: i32, %arg1: i32) -> (i32, i32, i32) {
    %c0_i32 = arith.constant 0 : i32
    %c0_i32_0 = arith.constant 0 : i32
    %c0_i32_1 = arith.constant 0 : i32
    return %arg0, %c0_i32, %c0_i32_0 : i32, i32, i32
  }
  func.func @transform_11(%arg0: i32, %arg1: i32) -> (i32, i32, i32) {
    %c0_i32 = arith.constant 0 : i32
    %c0_i32_0 = arith.constant 0 : i32
    return %arg0, %c0_i32, %arg1 : i32, i32, i32
  }
}

</mosaic_0001>

<bundles_post_ra>
// kernel: tpu_custom_call.1
= control target key start
LH: loop header
LB: loop body
LE: loop exit
PB: predicated region body
PF: predicated region fallthrough
CT: control target
= control target key end

     0   :  { %s1521_s17 = smov 0   ;;  %s1523_s18 = smov 0   ;;  %s1682_s0 = inlined_call_operand.vmem [shape: f32[2,2,256], index: 0, kind: input, shape index: {}]   ;;  %s1683_s1 = inlined_call_operand.vmem [shape: f32[2,32,2], index: 1, kind: input, shape index: {}]   ;;  %s1684_s2 = inlined_call_operand.vmem [shape: f32[2,32,1], index: 2, kind: input, shape index: {}]   ;;  %s1685_s3 = inlined_call_operand.vmem [shape: f32[32,32], index: 3, kind: input, shape index: {}]   ;;  %s1686_s4 = inlined_call_operand.vmem [shape: f32[32,1], index: 4, kind: input, shape index: {}]   ;;  %s1687_s5 = inlined_call_operand.vmem [shape: f32[32,32], index: 5, kind: input, shape index: {}]   ;;  %s1688_s6 = inlined_call_operand.vmem [shape: f32[32,1], index: 6, kind: input, shape index: {}]   ;;  %s1689_s7 = inlined_call_operand.vmem [shape: f32[32,32], index: 7, kind: input, shape index: {}]   ;;  %s1690_s8 = inlined_call_operand.vmem [shape: f32[32,1], index: 8, kind: input, shape index: {}]   ;;  %s1691_s9 = inlined_call_operand.vmem [shape: f32[2,3,32], index: 9, kind: input, shape index: {}]   ;;  %s1692_s10 = inlined_call_operand.vmem [shape: f32[2,3,1], index: 10, kind: input, shape index: {}]   ;;  %s1693_s11 = inlined_call_operand.vmem [shape: f32[2,3,256], index: 11, kind: output, shape index: {}]  }
   0x1   :  { %s1525_s19 = smov 0  }
   0x2 LB: > { %s33_s20 = sadd.s32 1, %s1453_s18  ;;  %p1330_p0 = scmp.ge.s32.totalorder %s1457_s19, 1  ;;  %s1457_s19 = sphi %s1525_s19, %s21_s19   ;;  %s1453_s18 = sphi %s1523_s18, %s1695_s18   ;;  %s1449_s17 = sphi %s1521_s17, %s1694_s17  }
   0x3   : > { %p35_p1 = scmp.ge.s32.totalorder %s33_s20, 2  ;;  %p396_p2 = scmp.lt.s32.totalorder %s1457_s19, 3 }
   0x5   : > { %s1697_s20 = smov (%p35_p1, %s33_s20), 0  ;;  %p397_p3 = pnand %p1330_p0, %p396_p2 }
   0x6   : > { %p463_p4 = scmp.lt.s32.totalorder (!%p397_p3), %s1449_s17, 1 }
   0x7   : > { %400 = sbr.rel (%p397_p3) target bundleno = 1126 (0x466), region = 64 }
   0xc   : > { %v1459_v0 = vmov 0.0   ;;  %v1460_v1 = vmov 0   ;;  %s1699_s17 = smov (!%p463_p4, %s1449_s17), 1  ;;  %vm551_vm0 = vcmask 1041408   ;;  %vm538_vm1 = vcmask 15360   ;;  %v700_v10 = vld [vmem:[%s1686_s4 + $0x18] sm:$0xff] }
   0xd   : > { %620 = vmatprep.mubr.f32.mxu0 %v1459_v0  ;;  %1401 = vset.pattern.permute.xlu0 %v1460_v1  ;;  %s1544_s21 = sshll.u32 %s1699_s17, 2  ;;  %s1372_s22 = sshll.u32 %s1699_s17, 5  ;;  %v699_v11 = vld [vmem:[%s1686_s4 + $0x10] sm:$0xff]  ;;  %v698_v13 = vld [vmem:[%s1686_s4 + $0x8] sm:$0xff]  ;;  %v697_v14 = vld [vmem:[%s1686_s4] sm:$0xff]  ;;  %vm721_vm2 = vcmask 261120  }
   0xe   : > { %1402 = vset.pattern.permute.xlu1 %v1460_v1  ;;  %798 = vmatprep.mubr.f32.mxu1 %v1459_v0  ;;  %s470_s25 = scalar_lea.vmem %s1682_s0, %s1544_s21  ;;  %s476_s28 = scalar_lea.vmem %s1683_s1, %s1372_s22  ;;  %v838_v16 = vld [vmem:[%s1688_s6 + $0x18] sm:$0xff]  ;;  %v837_v17 = vld [vmem:[%s1688_s6 + $0x10] sm:$0xff]  ;;  %v836_v18 = vld [vmem:[%s1688_s6 + $0x8] sm:$0xff] }
   0xf   : > { %v1341_v2 = vld.sshfl [vmem:[%s470_s25] sm:$0x33 pattern:$0x76325410]  ;;  %s481_s12 = scalar_lea.vmem %s1684_s2, %s1372_s22  ;;  %v502_v9 = vld [vmem:[%s476_s28 + $0x8] sm:$0xff]  ;;  %v503_v12 = vld [vmem:[%s476_s28 + $0x10] sm:$0xff]  ;;  %s489_s29 = scalar_lea.vmem %s1692_s10, %s1544_s21 }
  0x10   : > { %v537_v3 = vcombine.high %v1341_v2, %v1341_v2  ;;  %v501_v4 = vld [vmem:[%s476_s28] sm:$0xff]  ;;  %v508_v5 = vld [vmem:[%s481_s12 + $0x18] sm:$0xff]  ;;  %v506_v6 = vld [vmem:[%s481_s12 + $0x8] sm:$0xff]  ;;  %s485_s30 = scalar_lea.vmem %s1691_s9, %s1544_s21 }
  0x11   : > { %526 = vperm.xlu0 %1401, %v508_v5   ;;  %v507_v7 = vld [vmem:[%s481_s12 + $0x10] sm:$0xff]  ;;  %516 = vperm.xlu1 %1402, %v506_v6   ;;  %v505_v8 = vld [vmem:[%s481_s12] sm:$0xff]  ;;  %v504_v15 = vld [vmem:[%s476_s28 + $0x18] sm:$0xff]  ;;  %s1374_s12 = sshll.u32 %s1699_s17, 3 }
  0x12   : > { %1342 = vmatprep.subr.msk.mxu0 %vm551_vm0, %v537_v3  ;;  %v835_v19 = vld [vmem:[%s1688_s6] sm:$0xff]  ;;  %v975_v20 = vld [vmem:[%s1690_s8 + $0x18] sm:$0xff]  ;;  %v974_v21 = vld [vmem:[%s1690_s8 + $0x10] sm:$0xff]  ;;  %s498_s28 = scalar_lea.vmem %s1693_s11, %s1374_s12 }
  0x13   : > { %1343 = vmatpush1.msk.msra.mxu0 %vm551_vm0, %v1341_v2  ;;  %v973_v22 = vld [vmem:[%s1690_s8 + $0x8] sm:$0xff]  ;;  %v972_v23 = vld [vmem:[%s1690_s8] sm:$0xff] }
  0x14   : > { %1344 = vmatmul.mubr.msk.f32.vlgmr.msra.gmra.mxu0 %vm538_vm1, %v501_v4  ;;  %v1106_v24 = vld [vmem:[%s489_s29] sm:$0x7] }
  0x15   : > { %626 = vmatprep.mubr.f32.mxu0 %v1459_v0  ;;  %521 = vperm.xlu0 %1401, %v507_v7  }
  0x16   : > { %511 = vperm.xlu1 %1402, %v505_v8  }
  0x18   : > { %1345 = vmatmul.mubr.msk.f32.gmra.mxu0 %vm538_vm1, %v502_v9 }
  0x19   : > { %632 = vmatprep.mubr.f32.mxu0 %v1459_v0  ;;  %718 = vperm.xlu0 %1401, %v700_v10  }
  0x1a   : > { %713 = vperm.xlu1 %1402, %v699_v11  }
  0x1c   : > { %1346 = vmatmul.mubr.msk.f32.gmra.mxu0 %vm538_vm1, %v503_v12 }
  0x1d   : > { %638 = vmatprep.mubr.f32.mxu0 %v1459_v0  ;;  %708 = vperm.xlu0 %1401, %v698_v13   ;;  %v693_v13 = vld [vmem:[%s1685_s3] sm:$0xff] }
  0x1e   : > { %703 = vperm.xlu1 %1402, %v697_v14  }
  0x20   : > { %1347 = vmatmul.mubr.msk.f32.gmra.mxu0 %vm538_vm1, %v504_v15  ;;  %v694_v15 = vld [vmem:[%s1685_s3 + $0x8] sm:$0xff] }
  0x21   : > { %935 = vmatprep.mubr.f32.mxu0 %v1459_v0  ;;  %856 = vperm.xlu0 %1401, %v838_v16   ;;  %v695_v16 = vld [vmem:[%s1685_s3 + $0x10] sm:$0xff] }
  0x22   : > { %851 = vperm.xlu1 %1402, %v837_v17   ;;  %v696_v17 = vld [vmem:[%s1685_s3 + $0x18] sm:$0xff] }
  0x25   : > { %846 = vperm.xlu0 %1401, %v836_v18  }
  0x26   : > { %841 = vperm.xlu1 %1402, %v835_v19  }
  0x29   : > { %993 = vperm.xlu0 %1401, %v975_v20  }
  0x2a   : > { %988 = vperm.xlu1 %1402, %v974_v21  }
  0x2d   : > { %983 = vperm.xlu0 %1401, %v973_v22  }
  0x2e   : > { %978 = vperm.xlu1 %1402, %v972_v23  }
  0x31   : > { %1109 = vperm.xlu0 %1401, %v1106_v24  }
  0x8c   : > { %v527_v27 = vpop.permute.xlu0 %526  ;;  %v517_v29 = vpop.permute.xlu1 %516 }
  0x90   : > { %v522_v33 = vpop.permute.xlu0 %521 }
  0x91   : > { %v512_v38 = vpop.permute.xlu1 %511 }
  0x94   : > { %v719_v23 = vpop.permute.xlu0 %718 }
  0xd4   : > { %v622_v25 = vpop.f32.mrf.mxu0 }
  0xd5   : > { %v623_v44 = vadd.f32 %v622_v25, %v512_v38  ;;  %v714_v25 = vpop.permute.xlu1 %713 }
  0xd6   : > { %v624_v26 = vpop.f32.mrf.mxu0 }
  0xd7   : > { %v625_v41 = vadd.f32 %v624_v26, %v512_v38  ;;  %v1348_v52 = vmul.f32 -1.442695, %v623_v44 }
  0xd8   : > { %v628_v28 = vpop.f32.mrf.mxu0 }
  0xd9   : > { %v629_v39 = vadd.f32 %v628_v28, %v517_v29  ;;  %v1349_v50 = vmul.f32 -1.442695, %v625_v41 }
  0xda   : > { %v630_v30 = vpop.f32.mrf.mxu0 }
  0xdb   : > { %v631_v31 = vadd.f32 %v630_v30, %v517_v29  ;;  %v1350_v49 = vmul.f32 -1.442695, %v629_v39 }
  0xdc   : > { %v634_v32 = vpop.f32.mrf.mxu0 }
  0xdd   : > { %v635_v34 = vadd.f32 %v634_v32, %v522_v33  ;;  %v1351_v36 = vmul.f32 -1.442695, %v631_v31  ;;  %v709_v31 = vpop.permute.xlu0 %708 }
  0xde   : > { %v636_v35 = vpop.f32.mrf.mxu0 }
  0xdf   : > { %v637_v37 = vadd.f32 %v636_v35, %v522_v33  ;;  %v1352_v45 = vmul.f32 -1.442695, %v635_v34  ;;  %1403 = vpow2.f32 %v1351_v36  ;;  %v704_v35 = vpop.permute.xlu1 %703 }
  0xe0   : > { %v640_v40 = vpop.f32.mrf.mxu0 }
  0xe1   : > { %v1353_v42 = vmul.f32 -1.442695, %v637_v37  ;;  %v641_v43 = vadd.f32 %v640_v40, %v527_v27 }
  0xe2   : > { %v642_v46 = vpop.f32.mrf.mxu0 }
  0xe3   : > { %v1354_v47 = vmul.f32 -1.442695, %v641_v43  ;;  %v643_v48 = vadd.f32 %v642_v46, %v527_v27  ;;  %1405 = vpow2.f32 %v1353_v42  ;;  %v831_v46 = vld [vmem:[%s1687_s5] sm:$0xff] }
  0xe5   : > { %1407 = vpow2.f32 %v1354_v47  ;;  %v1355_v51 = vmul.f32 -1.442695, %v643_v48  ;;  %v832_v47 = vld [vmem:[%s1687_s5 + $0x8] sm:$0xff]  ;;  %v833_v48 = vld [vmem:[%s1687_s5 + $0x10] sm:$0xff] }
  0xe6   : > { %1409 = vpow2.f32 %v1352_v45 }
  0xe7   : > { %1411 = vpow2.f32 %v1355_v51 }
  0xe8   : > { %1413 = vpow2.f32 %v1350_v49  ;;  %v834_v49 = vld [vmem:[%s1687_s5 + $0x18] sm:$0xff] }
  0xe9   : > { %1415 = vpow2.f32 %v1349_v50 }
  0xea   : > { %1417 = vpow2.f32 %v1348_v52 }
  0xec   : > { %v1404_v53 = vpop.eup %1403 }
  0xed   : > { %v672_v2 = vadd.f32 1.0, %v1404_v53 }
  0xf0   : > { %v1406_v54 = vpop.eup %1405 }
  0xf1   : > { %v674_v60 = vadd.f32 1.0, %v1406_v54 }
  0xf2   : > { %v1408_v55 = vpop.eup %1407 }
  0xf3   : > { %v1410_v56 = vpop.eup %1409  ;;  %v675_v58 = vadd.f32 1.0, %v1408_v55  ;;  %v857_v55 = vpop.permute.xlu0 %856 }
  0xf4   : > { %v1412_v57 = vpop.eup %1411  ;;  %v673_v63 = vadd.f32 1.0, %v1410_v56 }
  0xf5   : > { %v1414_v59 = vpop.eup %1413  ;;  %v676_v61 = vadd.f32 1.0, %v1412_v57  ;;  %v852_v57 = vpop.permute.xlu1 %851 }
  0xf6   : > { %v1416_v62 = vpop.eup %1415  ;;  %v671_v3 = vadd.f32 1.0, %v1414_v59 }
  0xf7   : > { %v1418_v1 = vpop.eup %1417  ;;  %1419 = vrcp.f32 %v676_v61  ;;  %v670_v4 = vadd.f32 1.0, %v1416_v62 }
  0xf8   : > { %1421 = vrcp.f32 %v675_v58  ;;  %v669_v5 = vadd.f32 1.0, %v1418_v1 }
  0xf9   : > { %1423 = vrcp.f32 %v674_v60 }
  0xfa   : > { %1425 = vrcp.f32 %v673_v63  ;;  %v847_v63 = vpop.permute.xlu0 %846 }
  0xfb   : > { %1427 = vrcp.f32 %v672_v2 }
  0xfc   : > { %1429 = vrcp.f32 %v671_v3 }
  0xfd   : > { %1431 = vrcp.f32 %v670_v4  ;;  %v842_v4 = vpop.permute.xlu1 %841 }
  0xfe   : > { %1433 = vrcp.f32 %v669_v5 }
 0x104   : > { %v1420_v6 = vpop.eup %1419 }
 0x105   : > { %v1422_v7 = vpop.eup %1421  ;;  %758 = vmatprep.subr.mxu1 %v1420_v6 }
 0x106   : > { %v1424_v8 = vpop.eup %1423  ;;  %759 = vmatpush1.msra.mxu1 %v1422_v7 }
 0x107   : > { %v1426_v9 = vpop.eup %1425  ;;  %760 = vmatprep.subr.mxu1 %v1424_v8 }
 0x108   : > { %v1428_v10 = vpop.eup %1427  ;;  %761 = vmatpush1.msra.mxu1 %v1426_v9 }
 0x109   : > { %v1430_v11 = vpop.eup %1429  ;;  %762 = vmatprep.subr.mxu1 %v1428_v10 }
 0x10a   : > { %v1432_v12 = vpop.eup %1431  ;;  %763 = vmatpush1.msra.mxu1 %v1430_v11 }
 0x10b   : > { %v1434_v14 = vpop.eup %1433  ;;  %764 = vmatprep.subr.mxu1 %v1432_v12 }
 0x10c   : > { %765 = vmatpush1.msra.mxu1 %v1434_v14 }
 0x10d   : > { %1356 = vmatmul.mubr.msk.f32.vlgmr.msra.gmra.mxu1 %vm721_vm2, %v693_v13 }
 0x10e   : > { %804 = vmatprep.mubr.f32.mxu1 %v1459_v0 }
 0x111   : > { %1357 = vmatmul.mubr.msk.f32.gmra.mxu1 %vm721_vm2, %v694_v15  ;;  %v968_v15 = vld [vmem:[%s1689_s7] sm:$0xff] }
 0x112   : > { %810 = vmatprep.mubr.f32.mxu1 %v1459_v0 }
 0x115   : > { %1358 = vmatmul.mubr.msk.f32.gmra.mxu1 %vm721_vm2, %v695_v16  ;;  %v969_v16 = vld [vmem:[%s1689_s7 + $0x8] sm:$0xff] }
 0x116   : > { %816 = vmatprep.mubr.f32.mxu1 %v1459_v0 }
 0x119   : > { %1359 = vmatmul.mubr.msk.f32.gmra.mxu1 %vm721_vm2, %v696_v17  ;;  %v970_v17 = vld [vmem:[%s1689_s7 + $0x10] sm:$0xff] }
 0x11a   : > { %1072 = vmatprep.mubr.f32.mxu1 %v1459_v0 }
 0x1cd   : > { %v800_v18 = vpop.f32.mrf.mxu1 }
 0x1ce   : > { %v801_v40 = vadd.f32 %v800_v18, %v704_v35  ;;  %v971_v18 = vld [vmem:[%s1689_s7 + $0x18] sm:$0xff] }
 0x1cf   : > { %v802_v19 = vpop.f32.mrf.mxu1 }
 0x1d0   : > { %v803_v38 = vadd.f32 %v802_v19, %v704_v35  ;;  %v823_v45 = vmax.f32 %v801_v40, 0.0 }
 0x1d1   : > { %v806_v20 = vpop.f32.mrf.mxu1 }
 0x1d2   : > { %v807_v36 = vadd.f32 %v806_v20, %v709_v31  ;;  %v824_v44 = vmax.f32 %v803_v38, 0.0 }
 0x1d3   : > { %v808_v21 = vpop.f32.mrf.mxu1 }
 0x1d4   : > { %v809_v33 = vadd.f32 %v808_v21, %v709_v31  ;;  %v825_v43 = vmax.f32 %v807_v36, 0.0 }
 0x1d5   : > { %v812_v22 = vpop.f32.mrf.mxu1 }
 0x1d6   : > { %v813_v32 = vadd.f32 %v812_v22, %v714_v25  ;;  %v826_v42 = vmax.f32 %v809_v33, 0.0 }
 0x1d7   : > { %v814_v24 = vpop.f32.mrf.mxu1 }
 0x1d8   : > { %v815_v29 = vadd.f32 %v814_v24, %v714_v25  ;;  %v827_v41 = vmax.f32 %v813_v32, 0.0  ;;  %v994_v24 = vpop.permute.xlu0 %993 }
 0x1d9   : > { %v818_v26 = vpop.f32.mrf.mxu1 }
 0x1da   : > { %v819_v27 = vadd.f32 %v818_v26, %v719_v23  ;;  %v828_v39 = vmax.f32 %v815_v29, 0.0  ;;  %v989_v26 = vpop.permute.xlu1 %988 }
 0x1db   : > { %v820_v28 = vpop.f32.mrf.mxu1 }
 0x1dc   : > { %v821_v30 = vadd.f32 %v820_v28, %v719_v23  ;;  %v829_v37 = vmax.f32 %v819_v27, 0.0  ;;  %v984_v31 = vpop.permute.xlu0 %983 }
 0x1de   : > { %v830_v34 = vmax.f32 %v821_v30, 0.0  ;;  %v979_v35 = vpop.permute.xlu1 %978 }
 0x1e0   : > { %895 = vmatprep.subr.mxu0 %v830_v34 }
 0x1e1   : > { %896 = vmatpush1.msra.mxu0 %v829_v37 }
 0x1e2   : > { %897 = vmatprep.subr.mxu0 %v828_v39 }
 0x1e3   : > { %898 = vmatpush1.msra.mxu0 %v827_v41 }
 0x1e4   : > { %899 = vmatprep.subr.mxu0 %v826_v42 }
 0x1e5   : > { %900 = vmatpush1.msra.mxu0 %v825_v43 }
 0x1e6   : > { %901 = vmatprep.subr.mxu0 %v824_v44 }
 0x1e7   : > { %902 = vmatpush1.msra.mxu0 %v823_v45  ;;  %v1105_v45 = vld [vmem:[%s485_s30] sm:$0x7] }
 0x1e8   : > { %1360 = vmatmul.mubr.msk.f32.vlgmr.msra.gmra.mxu0 %vm721_vm2, %v831_v46 }
 0x1e9   : > { %941 = vmatprep.mubr.f32.mxu0 %v1459_v0 }
 0x1ec   : > { %1361 = vmatmul.mubr.msk.f32.gmra.mxu0 %vm721_vm2, %v832_v47 }
 0x1ed   : > { %947 = vmatprep.mubr.f32.mxu0 %v1459_v0 }
 0x1f0   : > { %1362 = vmatmul.mubr.msk.f32.gmra.mxu0 %vm721_vm2, %v833_v48  ;;  %v1110_v48 = vpop.permute.xlu0 %1109 }
 0x1f1   : > { %953 = vmatprep.mubr.f32.mxu0 %v1459_v0 }
 0x1f4   : > { %1363 = vmatmul.mubr.msk.f32.gmra.mxu0 %vm721_vm2, %v834_v49 }
 0x1f5   : > { %1179 = vmatprep.mubr.f32.mxu0 %v1459_v0 }
 0x2a8   : > { %v937_v50 = vpop.f32.mrf.mxu0 }
 0x2a9   : > { %v938_v9 = vadd.f32 %v937_v50, %v842_v4 }
 0x2aa   : > { %v939_v51 = vpop.f32.mrf.mxu0 }
 0x2ab   : > { %v940_v7 = vadd.f32 %v939_v51, %v842_v4  ;;  %v960_v14 = vmax.f32 %v938_v9, 0.0 }
 0x2ac   : > { %v943_v52 = vpop.f32.mrf.mxu0 }
 0x2ad   : > { %v944_v5 = vadd.f32 %v943_v52, %v847_v63  ;;  %v961_v13 = vmax.f32 %v940_v7, 0.0 }
 0x2ae   : > { %v945_v53 = vpop.f32.mrf.mxu0 }
 0x2af   : > { %v946_v2 = vadd.f32 %v945_v53, %v847_v63  ;;  %v962_v12 = vmax.f32 %v944_v5, 0.0 }
 0x2b0   : > { %v949_v54 = vpop.f32.mrf.mxu0 }
 0x2b1   : > { %v950_v1 = vadd.f32 %v949_v54, %v852_v57  ;;  %v963_v11 = vmax.f32 %v946_v2, 0.0 }
 0x2b2   : > { %v951_v56 = vpop.f32.mrf.mxu0 }
 0x2b3   : > { %v952_v61 = vadd.f32 %v951_v56, %v852_v57  ;;  %v964_v10 = vmax.f32 %v950_v1, 0.0 }
 0x2b4   : > { %v955_v58 = vpop.f32.mrf.mxu0 }
 0x2b5   : > { %v956_v59 = vadd.f32 %v955_v58, %v857_v55  ;;  %v965_v8 = vmax.f32 %v952_v61, 0.0 }
 0x2b6   : > { %v957_v60 = vpop.f32.mrf.mxu0 }
 0x2b7   : > { %v958_v62 = vadd.f32 %v957_v60, %v857_v55  ;;  %v966_v6 = vmax.f32 %v956_v59, 0.0 }
 0x2b9   : > { %v967_v3 = vmax.f32 %v958_v62, 0.0 }
 0x2bb   : > { %1032 = vmatprep.subr.mxu1 %v967_v3 }
 0x2bc   : > { %1033 = vmatpush1.msra.mxu1 %v966_v6 }
 0x2bd   : > { %1034 = vmatprep.subr.mxu1 %v965_v8 }
 0x2be   : > { %1035 = vmatpush1.msra.mxu1 %v964_v10 }
 0x2bf   : > { %1036 = vmatprep.subr.mxu1 %v963_v11 }
 0x2c0   : > { %1037 = vmatpush1.msra.mxu1 %v962_v12 }
 0x2c1   : > { %1038 = vmatprep.subr.mxu1 %v961_v13 }
 0x2c2   : > { %1039 = vmatpush1.msra.mxu1 %v960_v14 }
 0x2c3   : > { %1364 = vmatmul.mubr.msk.f32.vlgmr.msra.gmra.mxu1 %vm721_vm2, %v968_v15 }
 0x2c4   : > { %1078 = vmatprep.mubr.f32.mxu1 %v1459_v0 }
 0x2c7   : > { %1365 = vmatmul.mubr.msk.f32.gmra.mxu1 %vm721_vm2, %v969_v16 }
 0x2c8   : > { %1084 = vmatprep.mubr.f32.mxu1 %v1459_v0 }
 0x2cb   : > { %1366 = vmatmul.mubr.msk.f32.gmra.mxu1 %vm721_vm2, %v970_v17 }
 0x2cc   : > { %1090 = vmatprep.mubr.f32.mxu1 %v1459_v0 }
 0x2cf   : > { %1367 = vmatmul.mubr.msk.f32.gmra.mxu1 %vm721_vm2, %v971_v18 }
 0x383   : > { %v1074_v19 = vpop.f32.mrf.mxu1 }
 0x384   : > { %v1075_v40 = vadd.f32 %v1074_v19, %v979_v35 }
 0x385   : > { %v1076_v20 = vpop.f32.mrf.mxu1 }
 0x386   : > { %v1077_v38 = vadd.f32 %v1076_v20, %v979_v35  ;;  %v1097_v46 = vmax.f32 %v1075_v40, 0.0 }
 0x387   : > { %v1080_v21 = vpop.f32.mrf.mxu1 }
 0x388   : > { %v1081_v36 = vadd.f32 %v1080_v21, %v984_v31  ;;  %v1098_v44 = vmax.f32 %v1077_v38, 0.0 }
 0x389   : > { %v1082_v22 = vpop.f32.mrf.mxu1 }
 0x38a   : > { %v1083_v33 = vadd.f32 %v1082_v22, %v984_v31  ;;  %v1099_v43 = vmax.f32 %v1081_v36, 0.0 }
 0x38b   : > { %v1086_v23 = vpop.f32.mrf.mxu1 }
 0x38c   : > { %v1087_v32 = vadd.f32 %v1086_v23, %v989_v26  ;;  %v1100_v42 = vmax.f32 %v1083_v33, 0.0 }
 0x38d   : > { %v1088_v25 = vpop.f32.mrf.mxu1 }
 0x38e   : > { %v1089_v30 = vadd.f32 %v1088_v25, %v989_v26  ;;  %v1101_v41 = vmax.f32 %v1087_v32, 0.0 }
 0x38f   : > { %v1092_v27 = vpop.f32.mrf.mxu1 }
 0x390   : > { %v1093_v28 = vadd.f32 %v1092_v27, %v994_v24  ;;  %v1102_v39 = vmax.f32 %v1089_v30, 0.0 }
 0x391   : > { %v1094_v29 = vpop.f32.mrf.mxu1 }
 0x392   : > { %v1095_v0 = vadd.f32 %v1094_v29, %v994_v24  ;;  %v1103_v37 = vmax.f32 %v1093_v28, 0.0 }
 0x394   : > { %v1104_v34 = vmax.f32 %v1095_v0, 0.0 }
 0x396   : > { %1139 = vmatprep.subr.mxu0 %v1104_v34 }
 0x397   : > { %1140 = vmatpush1.msra.mxu0 %v1103_v37 }
 0x398   : > { %1141 = vmatprep.subr.mxu0 %v1102_v39 }
 0x399   : > { %1142 = vmatpush1.msra.mxu0 %v1101_v41 }
 0x39a   : > { %1143 = vmatprep.subr.mxu0 %v1100_v42 }
 0x39b   : > { %1144 = vmatpush1.msra.mxu0 %v1099_v43 }
 0x39c   : > { %1145 = vmatprep.subr.mxu0 %v1098_v44 }
 0x39d   : > { %1146 = vmatpush1.msra.mxu0 %v1097_v46 }
 0x39e   : > { %1368 = vmatmul.mubr.msk.f32.vlgmr.msra.gmra.mxu0 %vm721_vm2, %v1105_v45 }
 0x45e   : > { %v1181_v47 = vpop.f32.mrf.mxu0 }
 0x45f   : > { %v1182_v50 = vadd.f32 %v1181_v47, %v1110_v48 }
 0x460   : > { %v1183_v49 = vpop.f32.mrf.mxu0 }
 0x461   : > { %v1184_v51 = vadd.f32 %v1183_v49, %v1110_v48 }
 0x463   : > { %v1188_v52 = vcombine.low %v1182_v50, %v1184_v51 }
 0x465   : > { %1190 = vst [vmem:[%s498_s28] sm:$0x77] %v1188_v52 }
 0x466 PF: > { %s21_s19 = sadd.s32 1, %s1457_s19   ;;  %s1694_s17 = smov %s1453_s18 }
 0x467   : > { %p18_p5 = scmp.ge.s32.totalorder %s21_s19, 4   ;;  %s1695_s18 = smov %s1697_s20 }
 0x469   :  { %20 = sbr.rel (!%p18_p5) target bundleno = 2 (0x2), region = 106 }

</bundles_post_ra>
